<compile_context>
chip_gen: v6e
topology: v6e:2x2x1
jax: 0.10.0
libtpu: 0.0.40
codegen_flags: <defaults>
</compile_context>

<pallas_src>
import jax
import jax.numpy as jnp
import numpy as np
from jax.experimental import pallas as pl
from jax.experimental.pallas import tpu as pltpu

_EPS = 1e-5


def stu_imagenet_kernel(x_ref, w1_ref, bn1_ref, w2_ref, bn2_ref, o_ref, acc_ref):
    k = pl.program_id(0)

    @pl.when(k == 0)
    def _():
        acc_ref[...] = jnp.zeros_like(acc_ref)

    # ---- Linear 1, one hidden tile (MXU): bf16 inputs, f32 accumulation.
    # Bias omitted — it cancels under training-mode BatchNorm. ----
    h = jnp.dot(x_ref[...], w1_ref[...], preferred_element_type=jnp.float32)

    # ---- BatchNorm1d on this hidden tile (training-mode batch stats; the
    # batch dim is whole, hidden features are independent across tiles) +
    # Tanh.  gamma folded into the rsqrt scale; f32 elementwise math. ----
    mean1 = jnp.mean(h, axis=0, keepdims=True)
    var1 = jnp.maximum(jnp.mean(h * h, axis=0, keepdims=True) - mean1 * mean1, 0.0)
    scale1 = jax.lax.rsqrt(var1 + _EPS) * bn1_ref[0:1, :]   # gamma row
    h = jnp.tanh((h - mean1) * scale1 + bn1_ref[1:2, :])    # beta row

    # ---- Linear 2 partial product: accumulate into resident (B, D_OUT) f32
    # scratch; bias omitted (cancels under BN2). ----
    acc_ref[...] += jnp.dot(h.astype(jnp.bfloat16), w2_ref[...],
                            preferred_element_type=jnp.float32)

    # ---- Finalize: BatchNorm1d(D_OUT) + Tanh on the accumulated output. ----
    @pl.when(k == pl.num_programs(0) - 1)
    def _():
        y = acc_ref[...]
        mean2 = jnp.mean(y, axis=0, keepdims=True)
        var2 = jnp.maximum(jnp.mean(y * y, axis=0, keepdims=True) - mean2 * mean2, 0.0)
        scale2 = jax.lax.rsqrt(var2 + _EPS) * bn2_ref[0:1, :]
        o_ref[...] = jnp.tanh((y - mean2) * scale2 + bn2_ref[1:2, :]).astype(o_ref.dtype)


def stu_imagenet_forward(x, w1, g1, be1, w2, g2, be2, *, tile_k=512):
    B, d_in = x.shape
    hidden = w1.shape[1]
    d_out = w2.shape[1]

    # Large tiles keep the ~0.35 us/grid-step overhead negligible; fall back to
    # a single step if the hidden dim doesn't divide.
    tk = tile_k if (hidden % tile_k == 0 and hidden >= tile_k) else hidden
    nk = hidden // tk

    # Halve DMA bytes for x and the weights; MXU natively takes bf16.
    xb = x.astype(jnp.bfloat16)
    w1b = w1.astype(jnp.bfloat16)
    w2b = w2.astype(jnp.bfloat16)
    # Pack BN affine params: row 0 = gamma, row 1 = beta.
    bn1 = jnp.concatenate([g1, be1], axis=0)   # (2, hidden)
    bn2 = jnp.concatenate([g2, be2], axis=0)   # (2, d_out)

    cost = pl.CostEstimate(
        flops=2 * B * d_in * hidden + 2 * B * hidden * d_out,
        transcendentals=B * hidden + B * d_out,                  # tanh
        bytes_accessed=(xb.size * 2 + w1b.size * 2 + w2b.size * 2
                        + bn1.size * 4 + bn2.size * 4
                        + B * d_out * 4),
    )

    return pl.pallas_call(
        stu_imagenet_kernel,
        out_shape=jax.ShapeDtypeStruct((B, d_out), jnp.float32),
        grid=(nk,),
        in_specs=[
            pl.BlockSpec((B, d_in), lambda k: (0, 0)),     # x: resident
            pl.BlockSpec((d_in, tk), lambda k: (0, k)),    # w1: stream column tiles
            pl.BlockSpec((2, tk), lambda k: (0, k)),       # bn1 (gamma/beta) tile
            pl.BlockSpec((tk, d_out), lambda k: (k, 0)),   # w2: stream row tiles
            pl.BlockSpec((2, d_out), lambda k: (0, 0)),    # bn2: resident
        ],
        out_specs=pl.BlockSpec((B, d_out), lambda k: (0, 0)),  # resident output
        scratch_shapes=[pltpu.VMEM((B, d_out), jnp.float32)],  # y accumulator
        compiler_params=pltpu.CompilerParams(
            dimension_semantics=("arbitrary",)),               # reduction axis
        cost_estimate=cost,
    )(xb, w1b, bn1, w2b, bn2)


def stu_imagenet_reference(x, w1, b1, g1, be1, w2, b2, g2, be2):
    """PyTorch-equivalent forward in plain JAX (training-mode BN).

    Matmul inputs are rounded to bf16 to mirror the kernel's MXU path.  The
    Linear biases b1/b2 ARE included here — they cancel under training-mode
    BatchNorm, which is exactly why the kernel can drop them.
    """
    def bf(v):
        return v.astype(jnp.bfloat16).astype(jnp.float32)

    h = jnp.dot(bf(x), bf(w1), preferred_element_type=jnp.float32) + b1
    m1 = h.mean(0, keepdims=True)
    v1 = h.var(0, keepdims=True)
    h = jnp.tanh((h - m1) * jax.lax.rsqrt(v1 + _EPS) * g1 + be1)

    y = jnp.dot(bf(h), bf(w2), preferred_element_type=jnp.float32) + b2
    m2 = y.mean(0, keepdims=True)
    v2 = y.var(0, keepdims=True)
    return jnp.tanh((y - m2) * jax.lax.rsqrt(v2 + _EPS) * g2 + be2)


if __name__ == "__main__":
    # Small, lane/sublane-friendly instantiation of StuImageNet(img_input_dim,
    # minus_one_dim): hidden=2048 is hardcoded in the module; D_IN / D_OUT are
    # scaled down from 4096 / 1024 for a quick self-contained run.  The
    # HIDDEN-tiled grid (TK=512 -> 4 steps) exercises the streaming path.
    B, D_IN, HIDDEN, D_OUT = 8, 256, 2048, 128

    key = jax.random.PRNGKey(0)
    k_x, k_w1, k_b1, k_w2, k_b2 = jax.random.split(key, 5)

    x = jax.random.normal(k_x, (B, D_IN), dtype=jnp.float32)

    # Deterministic param init (PyTorch-style uniform bounds for Linear).
    lim1 = 1.0 / np.sqrt(D_IN)
    w1 = jax.random.uniform(k_w1, (D_IN, HIDDEN), jnp.float32, -lim1, lim1)
    b1 = jax.random.uniform(k_b1, (1, HIDDEN), jnp.float32, -lim1, lim1)
    lim2 = 1.0 / np.sqrt(HIDDEN)
    w2 = jax.random.uniform(k_w2, (HIDDEN, D_OUT), jnp.float32, -lim2, lim2)
    b2 = jax.random.uniform(k_b2, (1, D_OUT), jnp.float32, -lim2, lim2)

    # BatchNorm affine params: default init gamma=1, beta=0.
    g1 = jnp.ones((1, HIDDEN), jnp.float32)
    be1 = jnp.zeros((1, HIDDEN), jnp.float32)
    g2 = jnp.ones((1, D_OUT), jnp.float32)
    be2 = jnp.zeros((1, D_OUT), jnp.float32)

    out = jax.jit(stu_imagenet_forward)(x, w1, g1, be1, w2, g2, be2)
    out = jax.block_until_ready(out)

    ref = stu_imagenet_reference(x, w1, b1, g1, be1, w2, b2, g2, be2)
    np.testing.assert_allclose(np.asarray(out), np.asarray(ref),
                               rtol=5e-3, atol=5e-3)

    assert out.shape == (B, D_OUT) and out.dtype == jnp.float32
    print("KERNEL_OK")
</pallas_src>

<mosaic_0001>
module attributes {stable_mosaic.version = 11 : i64} {
  func.func @stu_imagenet_kernel(%arg0: i32, %arg1: memref<8x256xbf16, #tpu.memory_space<vmem>>, %arg2: memref<256x512xbf16, #tpu.memory_space<vmem>>, %arg3: memref<2x512xf32, #tpu.memory_space<vmem>>, %arg4: memref<512x128xbf16, #tpu.memory_space<vmem>>, %arg5: memref<2x128xf32, #tpu.memory_space<vmem>>, %arg6: memref<8x128xf32, #tpu.memory_space<vmem>>, %arg7: memref<8x128xf32, #tpu.memory_space<vmem>>) attributes {dimension_semantics = [#tpu.dimension_semantics<arbitrary>], iteration_bounds = array<i64: 4>, scalar_prefetch = 0 : i64, scratch_operands = 1 : i64, tpu.core_type = #tpu.core_type<tc>, window_params = [{pipeline_mode = #tpu.pipeline_mode<synchronous>, transform_indices = @transform_0, window_bounds = array<i64: 8, 256>}, {transform_indices = @transform_1, window_bounds = array<i64: 256, 512>}, {transform_indices = @transform_2, window_bounds = array<i64: 2, 512>}, {transform_indices = @transform_3, window_bounds = array<i64: 512, 128>}, {pipeline_mode = #tpu.pipeline_mode<synchronous>, transform_indices = @transform_4, window_bounds = array<i64: 2, 128>}, {pipeline_mode = #tpu.pipeline_mode<synchronous>, transform_indices = @transform_5, window_bounds = array<i64: 8, 128>}]} {
    %c0_i32 = arith.constant 0 : i32
    %0 = arith.cmpi eq, %arg0, %c0_i32 : i32
    %1 = arith.extui %0 : i1 to i32
    %c0_i32_0 = arith.constant 0 : i32
    %2 = arith.cmpi ne, %1, %c0_i32_0 : i32
    scf.if %2 {
      %cst_21 = arith.constant 0.000000e+00 : f32
      %41 = vector.broadcast %cst_21 : f32 to vector<8x128xf32>
      %c0_22 = arith.constant 0 : index
      %c0_23 = arith.constant 0 : index
      %42 = vector.load %arg7[%c0_22, %c0_23] : memref<8x128xf32, #tpu.memory_space<vmem>>, vector<8x128xf32>
      tpu.vector_store %arg7[%c0_22, %c0_23], %41 {strides = array<i32>} : memref<8x128xf32, #tpu.memory_space<vmem>>, vector<8x128xf32>,
    } else {
    }
    %c0 = arith.constant 0 : index
    %c0_1 = arith.constant 0 : index
    %3 = vector.load %arg1[%c0, %c0_1] : memref<8x256xbf16, #tpu.memory_space<vmem>>, vector<8x256xbf16>
    %c0_2 = arith.constant 0 : index
    %c0_3 = arith.constant 0 : index
    %4 = vector.load %arg2[%c0_2, %c0_3] : memref<256x512xbf16, #tpu.memory_space<vmem>>, vector<256x512xbf16>
    %cst = arith.constant dense<0.000000e+00> : vector<8x512xf32>
    %5 = tpu.matmul %3, %4, %cst {dimension_numbers = #tpu.dot_dimension_numbers<[1], [0], [0], [1], [0, 0, 1, 1], [], []>} : vector<8x256xbf16>, vector<256x512xbf16>, vector<8x512xf32> -> vector<8x512xf32>
    %cst_4 = arith.constant dense<0.000000e+00> : vector<512xf32>
    %6 = vector.multi_reduction <add>, %5, %cst_4 [0] : vector<8x512xf32> to vector<512xf32>
    %7 = vector.shape_cast %6 : vector<512xf32> to vector<1x512xf32>
    %cst_5 = arith.constant 8.000000e+00 : f32
    %8 = vector.broadcast %cst_5 : f32 to vector<1x512xf32>
    %9 = arith.divf %7, %8 : vector<1x512xf32>
    %10 = arith.mulf %5, %5 : vector<8x512xf32>
    %cst_6 = arith.constant dense<0.000000e+00> : vector<512xf32>
    %11 = vector.multi_reduction <add>, %10, %cst_6 [0] : vector<8x512xf32> to vector<512xf32>
    %12 = vector.shape_cast %11 : vector<512xf32> to vector<1x512xf32>
    %cst_7 = arith.constant 8.000000e+00 : f32
    %13 = vector.broadcast %cst_7 : f32 to vector<1x512xf32>
    %14 = arith.divf %12, %13 : vector<1x512xf32>
    %15 = arith.mulf %9, %9 : vector<1x512xf32>
    %16 = arith.subf %14, %15 : vector<1x512xf32>
    %cst_8 = arith.constant 0.000000e+00 : f32
    %17 = vector.broadcast %cst_8 : f32 to vector<1x512xf32>
    %18 = arith.maximumf %16, %17 : vector<1x512xf32>
    %cst_9 = arith.constant 9.99999974E-6 : f32
    %19 = vector.broadcast %cst_9 : f32 to vector<1x512xf32>
    %20 = arith.addf %18, %19 : vector<1x512xf32>
    %21 = math.rsqrt %20 : vector<1x512xf32>
    %c0_10 = arith.constant 0 : index
    %c0_11 = arith.constant 0 : index
    %22 = vector.load %arg3[%c0_10, %c0_11] : memref<2x512xf32, #tpu.memory_space<vmem>>, vector<1x512xf32>
    %23 = arith.mulf %21, %22 : vector<1x512xf32>
    %24 = vector.broadcast %9 : vector<1x512xf32> to vector<8x512xf32>
    %25 = arith.subf %5, %24 : vector<8x512xf32>
    %26 = vector.broadcast %23 : vector<1x512xf32> to vector<8x512xf32>
    %27 = arith.mulf %25, %26 : vector<8x512xf32>
    %c1 = arith.constant 1 : index
    %c0_12 = arith.constant 0 : index
    %28 = vector.load %arg3[%c1, %c0_12] : memref<2x512xf32, #tpu.memory_space<vmem>>, vector<1x512xf32>
    %29 = vector.broadcast %28 : vector<1x512xf32> to vector<8x512xf32>
    %30 = arith.addf %27, %29 : vector<8x512xf32>
    %31 = math.tanh %30 : vector<8x512xf32>
    %c0_13 = arith.constant 0 : index
    %c0_14 = arith.constant 0 : index
    %32 = vector.load %arg7[%c0_13, %c0_14] : memref<8x128xf32, #tpu.memory_space<vmem>>, vector<8x128xf32>
    %33 = arith.truncf %31 : vector<8x512xf32> to vector<8x512xbf16>
    %c0_15 = arith.constant 0 : index
    %c0_16 = arith.constant 0 : index
    %34 = vector.load %arg4[%c0_15, %c0_16] : memref<512x128xbf16, #tpu.memory_space<vmem>>, vector<512x128xbf16>
    %cst_17 = arith.constant dense<0.000000e+00> : vector<8x128xf32>
    %35 = tpu.matmul %33, %34, %cst_17 {dimension_numbers = #tpu.dot_dimension_numbers<[1], [0], [0], [1], [0, 0, 1, 1], [], []>} : vector<8x512xbf16>, vector<512x128xbf16>, vector<8x128xf32> -> vector<8x128xf32>
    %36 = arith.addf %32, %35 : vector<8x128xf32>
    %c0_18 = arith.constant 0 : index
    %c0_19 = arith.constant 0 : index
    %37 = vector.load %arg7[%c0_18, %c0_19] : memref<8x128xf32, #tpu.memory_space<vmem>>, vector<8x128xf32>
    tpu.vector_store %arg7[%c0_18, %c0_19], %36 {strides = array<i32>} : memref<8x128xf32, #tpu.memory_space<vmem>>, vector<8x128xf32>,
    %c3_i32 = arith.constant 3 : i32
    %38 = arith.cmpi eq, %arg0, %c3_i32 : i32
    %39 = arith.extui %38 : i1 to i32
    %c0_i32_20 = arith.constant 0 : i32
    %40 = arith.cmpi ne, %39, %c0_i32_20 : i32
    scf.if %40 {
      %c0_21 = arith.constant 0 : index
      %c0_22 = arith.constant 0 : index
      %41 = vector.load %arg7[%c0_21, %c0_22] : memref<8x128xf32, #tpu.memory_space<vmem>>, vector<8x128xf32>
      %cst_23 = arith.constant dense<0.000000e+00> : vector<128xf32>
      %42 = vector.multi_reduction <add>, %41, %cst_23 [0] : vector<8x128xf32> to vector<128xf32>
      %43 = vector.shape_cast %42 : vector<128xf32> to vector<1x128xf32>
      %cst_24 = arith.constant 8.000000e+00 : f32
      %44 = vector.broadcast %cst_24 : f32 to vector<1x128xf32>
      %45 = arith.divf %43, %44 : vector<1x128xf32>
      %46 = arith.mulf %41, %41 : vector<8x128xf32>
      %cst_25 = arith.constant dense<0.000000e+00> : vector<128xf32>
      %47 = vector.multi_reduction <add>, %46, %cst_25 [0] : vector<8x128xf32> to vector<128xf32>
      %48 = vector.shape_cast %47 : vector<128xf32> to vector<1x128xf32>
      %cst_26 = arith.constant 8.000000e+00 : f32
      %49 = vector.broadcast %cst_26 : f32 to vector<1x128xf32>
      %50 = arith.divf %48, %49 : vector<1x128xf32>
      %51 = arith.mulf %45, %45 : vector<1x128xf32>
      %52 = arith.subf %50, %51 : vector<1x128xf32>
      %cst_27 = arith.constant 0.000000e+00 : f32
      %53 = vector.broadcast %cst_27 : f32 to vector<1x128xf32>
      %54 = arith.maximumf %52, %53 : vector<1x128xf32>
      %cst_28 = arith.constant 9.99999974E-6 : f32
      %55 = vector.broadcast %cst_28 : f32 to vector<1x128xf32>
      %56 = arith.addf %54, %55 : vector<1x128xf32>
      %57 = math.rsqrt %56 : vector<1x128xf32>
      %c0_29 = arith.constant 0 : index
      %c0_30 = arith.constant 0 : index
      %58 = vector.load %arg5[%c0_29, %c0_30] : memref<2x128xf32, #tpu.memory_space<vmem>>, vector<1x128xf32>
      %59 = arith.mulf %57, %58 : vector<1x128xf32>
      %60 = vector.broadcast %45 : vector<1x128xf32> to vector<8x128xf32>
      %61 = arith.subf %41, %60 : vector<8x128xf32>
      %62 = vector.broadcast %59 : vector<1x128xf32> to vector<8x128xf32>
      %63 = arith.mulf %61, %62 : vector<8x128xf32>
      %c1_31 = arith.constant 1 : index
      %c0_32 = arith.constant 0 : index
      %64 = vector.load %arg5[%c1_31, %c0_32] : memref<2x128xf32, #tpu.memory_space<vmem>>, vector<1x128xf32>
      %65 = vector.broadcast %64 : vector<1x128xf32> to vector<8x128xf32>
      %66 = arith.addf %63, %65 : vector<8x128xf32>
      %67 = math.tanh %66 : vector<8x128xf32>
      %c0_33 = arith.constant 0 : index
      %c0_34 = arith.constant 0 : index
      %68 = vector.load %arg6[%c0_33, %c0_34] : memref<8x128xf32, #tpu.memory_space<vmem>>, vector<8x128xf32>
      tpu.vector_store %arg6[%c0_33, %c0_34], %67 {strides = array<i32>} : memref<8x128xf32, #tpu.memory_space<vmem>>, vector<8x128xf32>,
    } else {
    }
    return
  }
  func.func @transform_0(%arg0: i32) -> (i32, i32) {
    %c0_i32 = arith.constant 0 : i32
    %c0_i32_0 = arith.constant 0 : i32
    %c0_i32_1 = arith.constant 0 : i32
    return %c0_i32, %c0_i32_0 : i32, i32
  }
  func.func @transform_1(%arg0: i32) -> (i32, i32) {
    %c0_i32 = arith.constant 0 : i32
    %c0_i32_0 = arith.constant 0 : i32
    return %c0_i32, %arg0 : i32, i32
  }
  func.func @transform_2(%arg0: i32) -> (i32, i32) {
    %c0_i32 = arith.constant 0 : i32
    %c0_i32_0 = arith.constant 0 : i32
    return %c0_i32, %arg0 : i32, i32
  }
  func.func @transform_3(%arg0: i32) -> (i32, i32) {
    %c0_i32 = arith.constant 0 : i32
    %c0_i32_0 = arith.constant 0 : i32
    return %arg0, %c0_i32 : i32, i32
  }
  func.func @transform_4(%arg0: i32) -> (i32, i32) {
    %c0_i32 = arith.constant 0 : i32
    %c0_i32_0 = arith.constant 0 : i32
    %c0_i32_1 = arith.constant 0 : i32
    return %c0_i32, %c0_i32_0 : i32, i32
  }
  func.func @transform_5(%arg0: i32) -> (i32, i32) {
    %c0_i32 = arith.constant 0 : i32
    %c0_i32_0 = arith.constant 0 : i32
    %c0_i32_1 = arith.constant 0 : i32
    return %c0_i32, %c0_i32_0 : i32, i32
  }
}

</mosaic_0001>

<bundles_post_ra>
// kernel: stu_imagenet_forward.1
= control target key start
LH: loop header
LB: loop body
LE: loop exit
PB: predicated region body
PF: predicated region fallthrough
CT: control target
= control target key end

     0   :  { %10 = vsyncpa [#allocation5], 0  ;;  %s1933_s18 = smov 0   ;;  %s1935_s19 = smov 0   ;;  %s2286_s0 = inlined_call_operand.vmem [shape: bf16[8,256], index: 0, kind: input, shape index: {}]   ;;  %s2287_s1 = inlined_call_operand.vmem [shape: bf16[256,2048], index: 1, kind: input, shape index: {}]   ;;  %s2288_s2 = inlined_call_operand.vmem [shape: f32[2,2048], index: 2, kind: input, shape index: {}]   ;;  %s2289_s3 = inlined_call_operand.vmem [shape: bf16[2048,128], index: 3, kind: input, shape index: {}]   ;;  %s2290_s4 = inlined_call_operand.vmem [shape: f32[2,128], index: 4, kind: input, shape index: {}]   ;;  %s2291_s5 = inlined_call_operand.hbm [shape: f32[8,128], index: 5, kind: output, shape index: {}]  }
   0x1   :  { %s1937_s20 = smov 0  }
   0x2 LB: > { %s1949_s21 = sadd.s32 4294967295, %s1899_s20   ;;  %s1952_s22 = sadd.s32 1, %s1899_s20   ;;  %s1899_s20 = sphi %s1937_s20, %s2294_s20   ;;  %s1895_s19 = sphi %s1935_s19, %s2293_s19   ;;  %s1891_s18 = sphi %s1933_s18, %s2292_s18  }
   0x3   : > { %s41_s23 = ssub.s32 %s1899_s20, %s1952_s22  ;;  %s44_s24 = sadd.s32 1, %s1895_s19 }
   0x4   : > { %p42_p0 = scmp.eq.s32.totalorder %s41_s23, 0  ;;  %p51_p1 = scmp.ne.s32.totalorder %s1895_s19, %s1891_s18 }
   0x5   : > { %p52_p2 = scmp.eq.s32.totalorder %s1899_s20, 0  ;;  %p1506_p4 = scmp.ge.s32.totalorder %s1899_s20, 4 }
   0x6   : > { %s1961_s25 = scalar_select %p42_p0, %s1895_s19, %s44_s24  }
   0x7   : > { %p53_p3 = por %p52_p2, %p51_p1  ;;  %177 = sbr.rel (%p1506_p4) target bundleno = 48 (0x30), region = 24 }
   0xc   : > { %180 = sbr.rel (!%p53_p3) target bundleno = 48 (0x30), region = 28  ;;  %s182_s26 = sand.u32 (%p53_p3), 1, %s1895_s19  }
   0xd   : > { %s1622_s27 = sshll.u32 (%p53_p3), %s1899_s20, 4  ;;  %s1507_s28 = sshll.u32 (%p53_p3), %s182_s26, 9 }
   0xe   : > { %s1969_s6 = scalar_lea.vmem (%p53_p3), %s2287_s1, %s1622_s27  ;;  %s1974_s7 = scalar_lea.vmem (%p53_p3), [#allocation3], %s1507_s28 }
   0xf   : > { %v200_v0 = vld [vmem:[%s1969_s6] sm:$0xff] (%p53_p3)  ;;  %v202_v1 = vld [vmem:[%s1969_s6 + $0x8] sm:$0xff] (%p53_p3) }
  0x10   : > { %v204_v2 = vld [vmem:[%s1969_s6 + $0x40] sm:$0xff] (%p53_p3)  ;;  %201 = vst [vmem:[%s1974_s7] sm:$0xff] (%p53_p3), %v200_v0  ;;  %203 = vst [vmem:[%s1974_s7 + $0x8] sm:$0xff] (%p53_p3), %v202_v1  ;;  %v206_v3 = vld [vmem:[%s1969_s6 + $0x48] sm:$0xff] (%p53_p3) }
  0x11   : > { %205 = vst [vmem:[%s1974_s7 + $0x10] sm:$0xff] %v204_v2  ;;  %v208_v4 = vld [vmem:[%s1969_s6 + $0x80] sm:$0xff]  ;;  %v210_v5 = vld [vmem:[%s1969_s6 + $0x88] sm:$0xff]  ;;  %207 = vst [vmem:[%s1974_s7 + $0x18] sm:$0xff] %v206_v3 }
  0x12   : > { %209 = vst [vmem:[%s1974_s7 + $0x20] sm:$0xff] %v208_v4  ;;  %211 = vst [vmem:[%s1974_s7 + $0x28] sm:$0xff] %v210_v5  ;;  %v212_v6 = vld [vmem:[%s1969_s6 + $0xc0] sm:$0xff]  ;;  %v214_v7 = vld [vmem:[%s1969_s6 + $0xc8] sm:$0xff] }
  0x13   : > { %v216_v8 = vld [vmem:[%s1969_s6 + $0x100] sm:$0xff]  ;;  %213 = vst [vmem:[%s1974_s7 + $0x30] sm:$0xff] %v212_v6  ;;  %215 = vst [vmem:[%s1974_s7 + $0x38] sm:$0xff] %v214_v7  ;;  %v218_v9 = vld [vmem:[%s1969_s6 + $0x108] sm:$0xff] }
  0x14   : > { %217 = vst [vmem:[%s1974_s7 + $0x40] sm:$0xff] %v216_v8  ;;  %v220_v10 = vld [vmem:[%s1969_s6 + $0x140] sm:$0xff]  ;;  %v222_v11 = vld [vmem:[%s1969_s6 + $0x148] sm:$0xff]  ;;  %219 = vst [vmem:[%s1974_s7 + $0x48] sm:$0xff] %v218_v9 }
  0x15   : > { %221 = vst [vmem:[%s1974_s7 + $0x50] sm:$0xff] %v220_v10  ;;  %223 = vst [vmem:[%s1974_s7 + $0x58] sm:$0xff] %v222_v11  ;;  %v224_v12 = vld [vmem:[%s1969_s6 + $0x180] sm:$0xff]  ;;  %v226_v13 = vld [vmem:[%s1969_s6 + $0x188] sm:$0xff] }
  0x16   : > { %v228_v14 = vld [vmem:[%s1969_s6 + $0x1c0] sm:$0xff]  ;;  %225 = vst [vmem:[%s1974_s7 + $0x60] sm:$0xff] %v224_v12  ;;  %227 = vst [vmem:[%s1974_s7 + $0x68] sm:$0xff] %v226_v13  ;;  %v230_v15 = vld [vmem:[%s1969_s6 + $0x1c8] sm:$0xff] }
  0x17   : > { %229 = vst [vmem:[%s1974_s7 + $0x70] sm:$0xff] %v228_v14  ;;  %v232_v16 = vld [vmem:[%s1969_s6 + $0x200] sm:$0xff]  ;;  %v234_v17 = vld [vmem:[%s1969_s6 + $0x208] sm:$0xff]  ;;  %231 = vst [vmem:[%s1974_s7 + $0x78] sm:$0xff] %v230_v15 }
  0x18   : > { %233 = vst [vmem:[%s1974_s7 + $0x80] sm:$0xff] %v232_v16  ;;  %235 = vst [vmem:[%s1974_s7 + $0x88] sm:$0xff] %v234_v17  ;;  %v236_v18 = vld [vmem:[%s1969_s6 + $0x240] sm:$0xff]  ;;  %v238_v19 = vld [vmem:[%s1969_s6 + $0x248] sm:$0xff] }
  0x19   : > { %v240_v20 = vld [vmem:[%s1969_s6 + $0x280] sm:$0xff]  ;;  %237 = vst [vmem:[%s1974_s7 + $0x90] sm:$0xff] %v236_v18  ;;  %239 = vst [vmem:[%s1974_s7 + $0x98] sm:$0xff] %v238_v19  ;;  %v242_v21 = vld [vmem:[%s1969_s6 + $0x288] sm:$0xff] }
  0x1a   : > { %241 = vst [vmem:[%s1974_s7 + $0xa0] sm:$0xff] %v240_v20  ;;  %v244_v22 = vld [vmem:[%s1969_s6 + $0x2c0] sm:$0xff]  ;;  %v246_v23 = vld [vmem:[%s1969_s6 + $0x2c8] sm:$0xff]  ;;  %243 = vst [vmem:[%s1974_s7 + $0xa8] sm:$0xff] %v242_v21 }
  0x1b   : > { %245 = vst [vmem:[%s1974_s7 + $0xb0] sm:$0xff] %v244_v22  ;;  %247 = vst [vmem:[%s1974_s7 + $0xb8] sm:$0xff] %v246_v23  ;;  %v248_v24 = vld [vmem:[%s1969_s6 + $0x300] sm:$0xff]  ;;  %v250_v25 = vld [vmem:[%s1969_s6 + $0x308] sm:$0xff] }
  0x1c   : > { %v252_v26 = vld [vmem:[%s1969_s6 + $0x340] sm:$0xff]  ;;  %249 = vst [vmem:[%s1974_s7 + $0xc0] sm:$0xff] %v248_v24  ;;  %251 = vst [vmem:[%s1974_s7 + $0xc8] sm:$0xff] %v250_v25  ;;  %v254_v27 = vld [vmem:[%s1969_s6 + $0x348] sm:$0xff] }
  0x1d   : > { %253 = vst [vmem:[%s1974_s7 + $0xd0] sm:$0xff] %v252_v26  ;;  %v256_v28 = vld [vmem:[%s1969_s6 + $0x380] sm:$0xff]  ;;  %v258_v29 = vld [vmem:[%s1969_s6 + $0x388] sm:$0xff]  ;;  %255 = vst [vmem:[%s1974_s7 + $0xd8] sm:$0xff] %v254_v27 }
  0x1e   : > { %257 = vst [vmem:[%s1974_s7 + $0xe0] sm:$0xff] %v256_v28  ;;  %259 = vst [vmem:[%s1974_s7 + $0xe8] sm:$0xff] %v258_v29  ;;  %v260_v30 = vld [vmem:[%s1969_s6 + $0x3c0] sm:$0xff]  ;;  %v262_v31 = vld [vmem:[%s1969_s6 + $0x3c8] sm:$0xff] }
  0x1f   : > { %v264_v32 = vld [vmem:[%s1969_s6 + $0x400] sm:$0xff]  ;;  %261 = vst [vmem:[%s1974_s7 + $0xf0] sm:$0xff] %v260_v30  ;;  %263 = vst [vmem:[%s1974_s7 + $0xf8] sm:$0xff] %v262_v31  ;;  %v266_v33 = vld [vmem:[%s1969_s6 + $0x408] sm:$0xff] }
  0x20   : > { %265 = vst [vmem:[%s1974_s7 + $0x100] sm:$0xff] %v264_v32  ;;  %v268_v34 = vld [vmem:[%s1969_s6 + $0x440] sm:$0xff]  ;;  %v270_v35 = vld [vmem:[%s1969_s6 + $0x448] sm:$0xff]  ;;  %267 = vst [vmem:[%s1974_s7 + $0x108] sm:$0xff] %v266_v33 }
  0x21   : > { %269 = vst [vmem:[%s1974_s7 + $0x110] sm:$0xff] %v268_v34  ;;  %271 = vst [vmem:[%s1974_s7 + $0x118] sm:$0xff] %v270_v35  ;;  %v272_v36 = vld [vmem:[%s1969_s6 + $0x480] sm:$0xff]  ;;  %v274_v37 = vld [vmem:[%s1969_s6 + $0x488] sm:$0xff] }
  0x22   : > { %v276_v38 = vld [vmem:[%s1969_s6 + $0x4c0] sm:$0xff]  ;;  %273 = vst [vmem:[%s1974_s7 + $0x120] sm:$0xff] %v272_v36  ;;  %275 = vst [vmem:[%s1974_s7 + $0x128] sm:$0xff] %v274_v37  ;;  %v278_v39 = vld [vmem:[%s1969_s6 + $0x4c8] sm:$0xff] }
  0x23   : > { %277 = vst [vmem:[%s1974_s7 + $0x130] sm:$0xff] %v276_v38  ;;  %v280_v40 = vld [vmem:[%s1969_s6 + $0x500] sm:$0xff]  ;;  %v282_v41 = vld [vmem:[%s1969_s6 + $0x508] sm:$0xff]  ;;  %279 = vst [vmem:[%s1974_s7 + $0x138] sm:$0xff] %v278_v39 }
  0x24   : > { %281 = vst [vmem:[%s1974_s7 + $0x140] sm:$0xff] %v280_v40  ;;  %283 = vst [vmem:[%s1974_s7 + $0x148] sm:$0xff] %v282_v41  ;;  %v284_v42 = vld [vmem:[%s1969_s6 + $0x540] sm:$0xff]  ;;  %v286_v43 = vld [vmem:[%s1969_s6 + $0x548] sm:$0xff] }
  0x25   : > { %v288_v44 = vld [vmem:[%s1969_s6 + $0x580] sm:$0xff]  ;;  %285 = vst [vmem:[%s1974_s7 + $0x150] sm:$0xff] %v284_v42  ;;  %287 = vst [vmem:[%s1974_s7 + $0x158] sm:$0xff] %v286_v43  ;;  %v290_v45 = vld [vmem:[%s1969_s6 + $0x588] sm:$0xff] }
  0x26   : > { %289 = vst [vmem:[%s1974_s7 + $0x160] sm:$0xff] %v288_v44  ;;  %v292_v46 = vld [vmem:[%s1969_s6 + $0x5c0] sm:$0xff]  ;;  %v294_v47 = vld [vmem:[%s1969_s6 + $0x5c8] sm:$0xff]  ;;  %291 = vst [vmem:[%s1974_s7 + $0x168] sm:$0xff] %v290_v45 }
  0x27   : > { %293 = vst [vmem:[%s1974_s7 + $0x170] sm:$0xff] %v292_v46  ;;  %295 = vst [vmem:[%s1974_s7 + $0x178] sm:$0xff] %v294_v47  ;;  %v296_v48 = vld [vmem:[%s1969_s6 + $0x600] sm:$0xff]  ;;  %v298_v49 = vld [vmem:[%s1969_s6 + $0x608] sm:$0xff] }
  0x28   : > { %v300_v50 = vld [vmem:[%s1969_s6 + $0x640] sm:$0xff]  ;;  %297 = vst [vmem:[%s1974_s7 + $0x180] sm:$0xff] %v296_v48  ;;  %299 = vst [vmem:[%s1974_s7 + $0x188] sm:$0xff] %v298_v49  ;;  %v302_v51 = vld [vmem:[%s1969_s6 + $0x648] sm:$0xff] }
  0x29   : > { %301 = vst [vmem:[%s1974_s7 + $0x190] sm:$0xff] %v300_v50  ;;  %v304_v52 = vld [vmem:[%s1969_s6 + $0x680] sm:$0xff]  ;;  %v306_v53 = vld [vmem:[%s1969_s6 + $0x688] sm:$0xff]  ;;  %303 = vst [vmem:[%s1974_s7 + $0x198] sm:$0xff] %v302_v51 }
  0x2a   : > { %305 = vst [vmem:[%s1974_s7 + $0x1a0] sm:$0xff] %v304_v52  ;;  %307 = vst [vmem:[%s1974_s7 + $0x1a8] sm:$0xff] %v306_v53  ;;  %v308_v54 = vld [vmem:[%s1969_s6 + $0x6c0] sm:$0xff]  ;;  %v310_v55 = vld [vmem:[%s1969_s6 + $0x6c8] sm:$0xff] }
  0x2b   : > { %v312_v56 = vld [vmem:[%s1969_s6 + $0x700] sm:$0xff]  ;;  %309 = vst [vmem:[%s1974_s7 + $0x1b0] sm:$0xff] %v308_v54  ;;  %311 = vst [vmem:[%s1974_s7 + $0x1b8] sm:$0xff] %v310_v55  ;;  %v314_v57 = vld [vmem:[%s1969_s6 + $0x708] sm:$0xff] }
  0x2c   : > { %313 = vst [vmem:[%s1974_s7 + $0x1c0] sm:$0xff] %v312_v56  ;;  %v316_v58 = vld [vmem:[%s1969_s6 + $0x740] sm:$0xff]  ;;  %v318_v59 = vld [vmem:[%s1969_s6 + $0x748] sm:$0xff]  ;;  %315 = vst [vmem:[%s1974_s7 + $0x1c8] sm:$0xff] %v314_v57 }
  0x2d   : > { %317 = vst [vmem:[%s1974_s7 + $0x1d0] sm:$0xff] %v316_v58  ;;  %319 = vst [vmem:[%s1974_s7 + $0x1d8] sm:$0xff] %v318_v59  ;;  %v320_v60 = vld [vmem:[%s1969_s6 + $0x780] sm:$0xff]  ;;  %v322_v61 = vld [vmem:[%s1969_s6 + $0x788] sm:$0xff] }
  0x2e   : > { %v324_v62 = vld [vmem:[%s1969_s6 + $0x7c0] sm:$0xff]  ;;  %321 = vst [vmem:[%s1974_s7 + $0x1e0] sm:$0xff] %v320_v60  ;;  %323 = vst [vmem:[%s1974_s7 + $0x1e8] sm:$0xff] %v322_v61  ;;  %v326_v63 = vld [vmem:[%s1969_s6 + $0x7c8] sm:$0xff] }
  0x2f   : > { %325 = vst [vmem:[%s1974_s7 + $0x1f0] sm:$0xff] %v324_v62  ;;  %327 = vst [vmem:[%s1974_s7 + $0x1f8] sm:$0xff] %v326_v63 }
  0x30 PF: > { %p1510_p5 = scmp.ge.s32.totalorder %s1899_s20, 1  ;;  %p350_p6 = scmp.lt.s32.totalorder %s1899_s20, 5 }
  0x32   : > { %p351_p7 = pnand %p1510_p5, %p350_p6 }
  0x33   : > { %s357_s8 = sand.u32 (!%p351_p7), 1, %s1891_s18   ;;  %s1512_s9 = sshll.u32 (!%p351_p7), %s1949_s21, 2 }
  0x34   : > { %354 = sbr.rel (%p351_p7) target bundleno = 673 (0x2a1), region = 59  ;;  %s1511_s10 = sshll.u32 (!%p351_p7), %s357_s8, 9 }
  0x35   : > { %p391_p8 = scmp.lt.s32.totalorder (!%p351_p7), %s1512_s9, 15  ;;  %s1514_s11 = sshll.u32 (!%p351_p7), %s1949_s21, 6 }
  0x36   : > { %p397_p9 = scmp.lt.s32.totalorder (!%p351_p7), %s1514_s11, 255  ;;  %s2116_s18 = scalar_lea.vmem (!%p351_p7), [#allocation3], %s1511_s10 }
  0x37   : > { %p1516_p10 = scmp.ne.s32.totalorder (!%p351_p7), %s1949_s21, 0 }
  0x39   : > { %s2296_s9 = smov (!%p391_p8, %s1512_s9), 15  ;;  %s2298_s11 = smov (!%p397_p9, %s1514_s11), 255 }
  0x3a   : > { %s1513_s12 = sshll.u32 %s2296_s9, 1  ;;  %s1515_s16 = sshll.u32 %s2298_s11, 2 }
  0x3b   : > { %s2109_s15 = scalar_lea.vmem %s2288_s2, %s1513_s12  ;;  %s2114_s23 = scalar_lea.vmem %s2289_s3, %s1515_s16 }
  0x3c   : > { %406 = sbr.rel (%p1516_p10) target bundleno = 67 (0x43), region = 67 }
  0x41   : > { %v1901_v0 = vmov 0.0  }
  0x42   : > { %407 = vst [vmem:[#allocation2] sm:$0xff] %v1901_v0 }
  0x43 PF: > { %v1699_v1 = vld [vmem:[%s2116_s18 + $0xe4] ss:$16 sps:$4 sm:$0xff]   ;;  %v1701_v2 = vld [vmem:[%s2116_s18 + $0xec] ss:$16 sps:$4 sm:$0xff]   ;;  %v1703_v3 = vld [vmem:[%s2116_s18 + $0xe0] ss:$16 sps:$4 sm:$0xff]  }
  0x44   : > { %800 = vmatprep.subr.bf16.mxu0 %v1699_v1  ;;  %v1704_v4 = vld [vmem:[%s2116_s18 + $0xe8] ss:$16 sps:$4 sm:$0xff]   ;;  %841 = vmatprep.subr.bf16.mxu1 %v1701_v2  ;;  %v1705_v5 = vld [vmem:[%s2116_s18 + $0xc4] ss:$16 sps:$4 sm:$0xff]   ;;  %v1707_v6 = vld [vmem:[%s2116_s18 + $0xcc] ss:$16 sps:$4 sm:$0xff]  }
  0x45   : > { %801 = vmatpush1.bf16.msra.mxu0 %v1703_v3  ;;  %842 = vmatpush1.bf16.msra.mxu1 %v1704_v4  ;;  %v1709_v7 = vld [vmem:[%s2116_s18 + $0xc0] ss:$16 sps:$4 sm:$0xff]   ;;  %v1710_v8 = vld [vmem:[%s2116_s18 + $0xc8] ss:$16 sps:$4 sm:$0xff]   ;;  %v1711_v9 = vld [vmem:[%s2116_s18 + $0xa4] ss:$16 sps:$4 sm:$0xff]  }
  0x46   : > { %802 = vmatprep.subr.bf16.mxu0 %v1705_v5  ;;  %843 = vmatprep.subr.bf16.mxu1 %v1707_v6  ;;  %v1713_v10 = vld [vmem:[%s2116_s18 + $0xac] ss:$16 sps:$4 sm:$0xff]   ;;  %v1715_v11 = vld [vmem:[%s2116_s18 + $0xa0] ss:$16 sps:$4 sm:$0xff]   ;;  %v1716_v12 = vld [vmem:[%s2116_s18 + $0xa8] ss:$16 sps:$4 sm:$0xff]  }
  0x47   : > { %v1717_v13 = vld [vmem:[%s2116_s18 + $0x84] ss:$16 sps:$4 sm:$0xff]   ;;  %v1719_v14 = vld [vmem:[%s2116_s18 + $0x8c] ss:$16 sps:$4 sm:$0xff]   ;;  %v1721_v15 = vld [vmem:[%s2116_s18 + $0x80] ss:$16 sps:$4 sm:$0xff]  }
  0x48   : > { %v1722_v16 = vld [vmem:[%s2116_s18 + $0x88] ss:$16 sps:$4 sm:$0xff]   ;;  %v1723_v17 = vld [vmem:[%s2116_s18 + $0x64] ss:$16 sps:$4 sm:$0xff]   ;;  %v1725_v18 = vld [vmem:[%s2116_s18 + $0x6c] ss:$16 sps:$4 sm:$0xff]  }
  0x49   : > { %803 = vmatpush1.bf16.msra.mxu0 %v1709_v7  ;;  %844 = vmatpush1.bf16.msra.mxu1 %v1710_v8  ;;  %v1727_v19 = vld [vmem:[%s2116_s18 + $0x60] ss:$16 sps:$4 sm:$0xff]   ;;  %v1728_v20 = vld [vmem:[%s2116_s18 + $0x68] ss:$16 sps:$4 sm:$0xff]   ;;  %v1729_v21 = vld [vmem:[%s2116_s18 + $0x44] ss:$16 sps:$4 sm:$0xff]  }
  0x4a   : > { %804 = vmatprep.subr.bf16.mxu0 %v1711_v9  ;;  %845 = vmatprep.subr.bf16.mxu1 %v1713_v10  ;;  %v1731_v22 = vld [vmem:[%s2116_s18 + $0x4c] ss:$16 sps:$4 sm:$0xff]   ;;  %v1733_v23 = vld [vmem:[%s2116_s18 + $0x40] ss:$16 sps:$4 sm:$0xff]   ;;  %v1734_v24 = vld [vmem:[%s2116_s18 + $0x48] ss:$16 sps:$4 sm:$0xff]  }
  0x4b   : > { %v1735_v25 = vld [vmem:[%s2116_s18 + $0x24] ss:$16 sps:$4 sm:$0xff]   ;;  %v1737_v26 = vld [vmem:[%s2116_s18 + $0x2c] ss:$16 sps:$4 sm:$0xff]   ;;  %v1739_v27 = vld [vmem:[%s2116_s18 + $0x20] ss:$16 sps:$4 sm:$0xff]  }
  0x4c   : > { %v1740_v28 = vld [vmem:[%s2116_s18 + $0x28] ss:$16 sps:$4 sm:$0xff]   ;;  %v1741_v29 = vld [vmem:[%s2116_s18 + $0x4] ss:$16 sps:$4 sm:$0xff]   ;;  %v1743_v30 = vld [vmem:[%s2116_s18 + $0xc] ss:$16 sps:$4 sm:$0xff]  }
  0x4d   : > { %805 = vmatpush1.bf16.msra.mxu0 %v1715_v11  ;;  %846 = vmatpush1.bf16.msra.mxu1 %v1716_v12  ;;  %v1745_v31 = vld [vmem:[%s2116_s18] ss:$16 sps:$4 sm:$0xff]   ;;  %v1746_v32 = vld [vmem:[%s2116_s18 + $0x8] ss:$16 sps:$4 sm:$0xff]   ;;  %v1747_v33 = vld [vmem:[%s2116_s18 + $0x1e4] ss:$16 sps:$4 sm:$0xff]  }
  0x4e   : > { %806 = vmatprep.subr.bf16.mxu0 %v1717_v13  ;;  %847 = vmatprep.subr.bf16.mxu1 %v1719_v14  ;;  %v1749_v34 = vld [vmem:[%s2116_s18 + $0x1ec] ss:$16 sps:$4 sm:$0xff]   ;;  %v1751_v35 = vld [vmem:[%s2116_s18 + $0x1e0] ss:$16 sps:$4 sm:$0xff]   ;;  %v1752_v36 = vld [vmem:[%s2116_s18 + $0x1e8] ss:$16 sps:$4 sm:$0xff]  }
  0x4f   : > { %v1753_v37 = vld [vmem:[%s2116_s18 + $0x1c4] ss:$16 sps:$4 sm:$0xff]   ;;  %v1755_v38 = vld [vmem:[%s2116_s18 + $0x1cc] ss:$16 sps:$4 sm:$0xff]   ;;  %v1757_v39 = vld [vmem:[%s2116_s18 + $0x1c0] ss:$16 sps:$4 sm:$0xff]  }
  0x50   : > { %v1758_v40 = vld [vmem:[%s2116_s18 + $0x1c8] ss:$16 sps:$4 sm:$0xff]   ;;  %v1759_v41 = vld [vmem:[%s2116_s18 + $0x1a4] ss:$16 sps:$4 sm:$0xff]   ;;  %v1761_v42 = vld [vmem:[%s2116_s18 + $0x1ac] ss:$16 sps:$4 sm:$0xff]  }
  0x51   : > { %807 = vmatpush1.bf16.msra.mxu0 %v1721_v15  ;;  %848 = vmatpush1.bf16.msra.mxu1 %v1722_v16  ;;  %v1763_v43 = vld [vmem:[%s2116_s18 + $0x1a0] ss:$16 sps:$4 sm:$0xff]   ;;  %v1764_v44 = vld [vmem:[%s2116_s18 + $0x1a8] ss:$16 sps:$4 sm:$0xff]   ;;  %v1765_v45 = vld [vmem:[%s2116_s18 + $0x184] ss:$16 sps:$4 sm:$0xff]  }
  0x52   : > { %808 = vmatprep.subr.bf16.mxu0 %v1723_v17  ;;  %849 = vmatprep.subr.bf16.mxu1 %v1725_v18  ;;  %v1767_v46 = vld [vmem:[%s2116_s18 + $0x18c] ss:$16 sps:$4 sm:$0xff]   ;;  %v1769_v47 = vld [vmem:[%s2116_s18 + $0x180] ss:$16 sps:$4 sm:$0xff]   ;;  %v1770_v48 = vld [vmem:[%s2116_s18 + $0x188] ss:$16 sps:$4 sm:$0xff]  }
  0x53   : > { %v408_v49 = vld [vmem:[%s2286_s0] sm:$0xff]  ;;  %v1771_v50 = vld [vmem:[%s2116_s18 + $0x164] ss:$16 sps:$4 sm:$0xff]   ;;  %v1775_v53 = vld [vmem:[%s2116_s18 + $0x160] ss:$16 sps:$4 sm:$0xff]   ;;  %p1616_p11 = scmp.ne.s32.totalorder %s1949_s21, 3 }
  0x54   : > { %v1773_v51 = vld [vmem:[%s2116_s18 + $0x16c] ss:$16 sps:$4 sm:$0xff]   ;;  %v1518_v52 = vcombine.high %v408_v49, %v408_v49  ;;  %v1776_v54 = vld [vmem:[%s2116_s18 + $0x168] ss:$16 sps:$4 sm:$0xff]   ;;  %v1777_v55 = vld [vmem:[%s2116_s18 + $0x144] ss:$16 sps:$4 sm:$0xff]   ;;  %v1517_v3 = vcombine.low %v408_v49, %v408_v49 }
  0x55   : > { %809 = vmatpush1.bf16.msra.mxu0 %v1727_v19  ;;  %850 = vmatpush1.bf16.msra.mxu1 %v1728_v20  ;;  %v1779_v56 = vld [vmem:[%s2116_s18 + $0x14c] ss:$16 sps:$4 sm:$0xff]   ;;  %v1781_v57 = vld [vmem:[%s2116_s18 + $0x140] ss:$16 sps:$4 sm:$0xff]   ;;  %v1782_v58 = vld [vmem:[%s2116_s18 + $0x148] ss:$16 sps:$4 sm:$0xff]  }
  0x56   : > { %810 = vmatprep.subr.bf16.mxu0 %v1729_v21  ;;  %851 = vmatprep.subr.bf16.mxu1 %v1731_v22  ;;  %v1783_v59 = vld [vmem:[%s2116_s18 + $0x124] ss:$16 sps:$4 sm:$0xff]   ;;  %v1785_v60 = vld [vmem:[%s2116_s18 + $0x12c] ss:$16 sps:$4 sm:$0xff]   ;;  %v1787_v61 = vld [vmem:[%s2116_s18 + $0x120] ss:$16 sps:$4 sm:$0xff]  }
  0x57   : > { %832 = vmatprep.mubr.bf16.mxu0 %v1518_v52  ;;  %873 = vmatprep.mubr.bf16.mxu1 %v1518_v52  ;;  %v1788_v62 = vld [vmem:[%s2116_s18 + $0x128] ss:$16 sps:$4 sm:$0xff]   ;;  %v1789_v63 = vld [vmem:[%s2116_s18 + $0x104] ss:$16 sps:$4 sm:$0xff]   ;;  %v1791_v0 = vld [vmem:[%s2116_s18 + $0x10c] ss:$16 sps:$4 sm:$0xff]  }
  0x58   : > { %v1793_v1 = vld [vmem:[%s2116_s18 + $0x100] ss:$16 sps:$4 sm:$0xff]   ;;  %v1794_v2 = vld [vmem:[%s2116_s18 + $0x108] ss:$16 sps:$4 sm:$0xff]  }
  0x59   : > { %811 = vmatpush1.bf16.msra.mxu0 %v1733_v23  ;;  %852 = vmatpush1.bf16.msra.mxu1 %v1734_v24  ;;  %v1797_v4 = vld [vmem:[%s2114_s23 + $0x78] sm:$0xff]   ;;  %v1801_v8 = vld [vmem:[%s2114_s23 + $0x70] sm:$0xff]   ;;  %v1805_v12 = vld [vmem:[%s2114_s23 + $0x68] sm:$0xff]  }
  0x5a   : > { %812 = vmatprep.subr.bf16.mxu0 %v1735_v25  ;;  %853 = vmatprep.subr.bf16.mxu1 %v1737_v26  ;;  %v1798_v5 = vld [vmem:[%s2114_s23 + $0xf8] sm:$0xff]   ;;  %v1802_v9 = vld [vmem:[%s2114_s23 + $0xf0] sm:$0xff]   ;;  %v1806_v13 = vld [vmem:[%s2114_s23 + $0xe8] sm:$0xff]  }
  0x5b   : > { %v1799_v6 = vld [vmem:[%s2114_s23 + $0x38] sm:$0xff]   ;;  %v1803_v10 = vld [vmem:[%s2114_s23 + $0x30] sm:$0xff]   ;;  %v1807_v14 = vld [vmem:[%s2114_s23 + $0x28] sm:$0xff]  }
  0x5c   : > { %v1800_v7 = vld [vmem:[%s2114_s23 + $0xb8] sm:$0xff]   ;;  %v1804_v11 = vld [vmem:[%s2114_s23 + $0xb0] sm:$0xff]   ;;  %v1808_v15 = vld [vmem:[%s2114_s23 + $0xa8] sm:$0xff]  }
  0x5d   : > { %813 = vmatpush1.bf16.msra.mxu0 %v1739_v27  ;;  %854 = vmatpush1.bf16.msra.mxu1 %v1740_v28  ;;  %v1809_v16 = vld [vmem:[%s2114_s23 + $0x60] sm:$0xff]   ;;  %v1813_v20 = vld [vmem:[%s2114_s23 + $0x58] sm:$0xff]   ;;  %v1817_v24 = vld [vmem:[%s2114_s23 + $0x50] sm:$0xff]  }
  0x5e   : > { %814 = vmatprep.subr.bf16.mxu0 %v1741_v29  ;;  %855 = vmatprep.subr.bf16.mxu1 %v1743_v30  ;;  %v1810_v17 = vld [vmem:[%s2114_s23 + $0xe0] sm:$0xff]   ;;  %v1814_v21 = vld [vmem:[%s2114_s23 + $0xd8] sm:$0xff]   ;;  %v1818_v25 = vld [vmem:[%s2114_s23 + $0xd0] sm:$0xff]  }
  0x5f   : > { %v1811_v18 = vld [vmem:[%s2114_s23 + $0x20] sm:$0xff]   ;;  %v1815_v22 = vld [vmem:[%s2114_s23 + $0x18] sm:$0xff]   ;;  %v1819_v26 = vld [vmem:[%s2114_s23 + $0x10] sm:$0xff]  }
  0x60   : > { %v1812_v19 = vld [vmem:[%s2114_s23 + $0xa0] sm:$0xff]   ;;  %v1816_v23 = vld [vmem:[%s2114_s23 + $0x98] sm:$0xff]   ;;  %v1820_v27 = vld [vmem:[%s2114_s23 + $0x90] sm:$0xff]  }
  0x61   : > { %815 = vmatpush1.bf16.msra.mxu0 %v1745_v31  ;;  %856 = vmatpush1.bf16.msra.mxu1 %v1746_v32  ;;  %v1821_v28 = vld [vmem:[%s2114_s23 + $0x48] sm:$0xff]   ;;  %v1825_v32 = vld [vmem:[%s2114_s23 + $0x40] sm:$0xff]  }
  0x62   : > { %816 = vmatprep.subr.bf16.mxu0 %v1747_v33  ;;  %857 = vmatprep.subr.bf16.mxu1 %v1749_v34  ;;  %v1822_v29 = vld [vmem:[%s2114_s23 + $0xc8] sm:$0xff]   ;;  %v1826_v33 = vld [vmem:[%s2114_s23 + $0xc0] sm:$0xff]  }
  0x63   : > { %v1823_v30 = vld [vmem:[%s2114_s23 + $0x8] sm:$0xff]   ;;  %v1827_v34 = vld [vmem:[%s2114_s23] sm:$0xff]  }
  0x64   : > { %v1824_v31 = vld [vmem:[%s2114_s23 + $0x88] sm:$0xff]  }
  0x65   : > { %817 = vmatpush2.bf16.msra.mxu0 %v1751_v35  ;;  %858 = vmatpush2.bf16.msra.mxu1 %v1752_v36  ;;  %v1828_v35 = vld [vmem:[%s2114_s23 + $0x80] sm:$0xff]  }
  0x66   : > { %818 = vmatprep.subr.bf16.mxu0 %v1753_v37  ;;  %859 = vmatprep.subr.bf16.mxu1 %v1755_v38 }
  0x69   : > { %819 = vmatpush2.bf16.msra.mxu0 %v1757_v39  ;;  %860 = vmatpush2.bf16.msra.mxu1 %v1758_v40 }
  0x6a   : > { %820 = vmatprep.subr.bf16.mxu0 %v1759_v41  ;;  %861 = vmatprep.subr.bf16.mxu1 %v1761_v42 }
  0x6d   : > { %821 = vmatpush2.bf16.msra.mxu0 %v1763_v43  ;;  %862 = vmatpush2.bf16.msra.mxu1 %v1764_v44 }
  0x6e   : > { %822 = vmatprep.subr.bf16.mxu0 %v1765_v45  ;;  %863 = vmatprep.subr.bf16.mxu1 %v1767_v46 }
  0x71   : > { %823 = vmatpush2.bf16.msra.mxu0 %v1769_v47  ;;  %864 = vmatpush2.bf16.msra.mxu1 %v1770_v48 }
  0x72   : > { %824 = vmatprep.subr.bf16.mxu0 %v1771_v50  ;;  %865 = vmatprep.subr.bf16.mxu1 %v1773_v51 }
  0x75   : > { %825 = vmatpush2.bf16.msra.mxu0 %v1775_v53  ;;  %866 = vmatpush2.bf16.msra.mxu1 %v1776_v54 }
  0x76   : > { %826 = vmatprep.subr.bf16.mxu0 %v1777_v55  ;;  %867 = vmatprep.subr.bf16.mxu1 %v1779_v56 }
  0x79   : > { %827 = vmatpush2.bf16.msra.mxu0 %v1781_v57  ;;  %868 = vmatpush2.bf16.msra.mxu1 %v1782_v58 }
  0x7a   : > { %828 = vmatprep.subr.bf16.mxu0 %v1783_v59  ;;  %869 = vmatprep.subr.bf16.mxu1 %v1785_v60 }
  0x7d   : > { %829 = vmatpush2.bf16.msra.mxu0 %v1787_v61  ;;  %870 = vmatpush2.bf16.msra.mxu1 %v1788_v62 }
  0x7e   : > { %830 = vmatprep.subr.bf16.mxu0 %v1789_v63  ;;  %871 = vmatprep.subr.bf16.mxu1 %v1791_v0 }
  0x81   : > { %831 = vmatpush2.bf16.msra.mxu0 %v1793_v1  ;;  %872 = vmatpush2.bf16.msra.mxu1 %v1794_v2 }
  0x82   : > { %1623 = vmatprep.subr.bf16.mxu0 %v1797_v4  ;;  %1645 = vmatprep.subr.bf16.mxu1 %v1798_v5 }
  0x84   : > { %833 = vmatmul.mubr.bf16.vlgmr.msra.gmra.mxu0 %v1517_v3  ;;  %874 = vmatmul.mubr.bf16.vlgmr.msra.gmra.mxu1 %v1517_v3 }
  0x85   : > { %1624 = vmatpush3.bf16.msra.mxu0 %v1799_v6  ;;  %1646 = vmatpush3.bf16.msra.mxu1 %v1800_v7 }
  0x86   : > { %1625 = vmatprep.subr.bf16.mxu0 %v1801_v8  ;;  %1647 = vmatprep.subr.bf16.mxu1 %v1802_v9 }
  0x89   : > { %1626 = vmatpush3.bf16.msra.mxu0 %v1803_v10  ;;  %1648 = vmatpush3.bf16.msra.mxu1 %v1804_v11 }
  0x8a   : > { %1627 = vmatprep.subr.bf16.mxu0 %v1805_v12  ;;  %1649 = vmatprep.subr.bf16.mxu1 %v1806_v13 }
  0x8d   : > { %1628 = vmatpush3.bf16.msra.mxu0 %v1807_v14  ;;  %1650 = vmatpush3.bf16.msra.mxu1 %v1808_v15 }
  0x8e   : > { %1629 = vmatprep.subr.bf16.mxu0 %v1809_v16  ;;  %1651 = vmatprep.subr.bf16.mxu1 %v1810_v17 }
  0x91   : > { %1630 = vmatpush3.bf16.msra.mxu0 %v1811_v18  ;;  %1652 = vmatpush3.bf16.msra.mxu1 %v1812_v19 }
  0x92   : > { %1631 = vmatprep.subr.bf16.mxu0 %v1813_v20  ;;  %1653 = vmatprep.subr.bf16.mxu1 %v1814_v21 }
  0x95   : > { %1632 = vmatpush3.bf16.msra.mxu0 %v1815_v22  ;;  %1654 = vmatpush3.bf16.msra.mxu1 %v1816_v23 }
  0x96   : > { %1633 = vmatprep.subr.bf16.mxu0 %v1817_v24  ;;  %1655 = vmatprep.subr.bf16.mxu1 %v1818_v25 }
  0x99   : > { %1634 = vmatpush3.bf16.msra.mxu0 %v1819_v26  ;;  %1656 = vmatpush3.bf16.msra.mxu1 %v1820_v27 }
  0x9a   : > { %1635 = vmatprep.subr.bf16.mxu0 %v1821_v28  ;;  %1657 = vmatprep.subr.bf16.mxu1 %v1822_v29 }
  0x9d   : > { %1636 = vmatpush3.bf16.msra.mxu0 %v1823_v30  ;;  %1658 = vmatpush3.bf16.msra.mxu1 %v1824_v31 }
  0x9e   : > { %1637 = vmatprep.subr.bf16.mxu0 %v1825_v32  ;;  %1659 = vmatprep.subr.bf16.mxu1 %v1826_v33 }
  0xa1   : > { %1638 = vmatpush3.bf16.msra.mxu0 %v1827_v34  ;;  %1660 = vmatpush3.bf16.msra.mxu1 %v1828_v35 }
 0x144   : > { %v2218_v36 = vpop.f32.mrf.mxu0  ;;  %v2220_v37 = vpop.f32.mrf.mxu1 }
 0x145   : > { %v882_v38 = vrot.slane %v2218_v36, 4  ;;  %v911_v39 = vmul.f32 %v2218_v36, %v2218_v36  ;;  %v894_v40 = vrot.slane %v2220_v37, 4  ;;  %v913_v41 = vmul.f32 %v2220_v37, %v2220_v37 }
 0x146   : > { %v2228_v42 = vpop.f32.mrf.mxu0  ;;  %v2230_v43 = vpop.f32.mrf.mxu1 }
 0x147   : > { %v883_v44 = vadd.f32 %v882_v38, %v2218_v36  ;;  %v915_v45 = vrot.slane %v911_v39, 4  ;;  %v895_v46 = vadd.f32 %v894_v40, %v2220_v37  ;;  %v927_v47 = vrot.slane %v913_v41, 4 }
 0x148   : > { %v888_v48 = vrot.slane %v2228_v42, 4  ;;  %v912_v49 = vmul.f32 %v2228_v42, %v2228_v42  ;;  %v900_v50 = vrot.slane %v2230_v43, 4  ;;  %v914_v51 = vmul.f32 %v2230_v43, %v2230_v43  ;;  %v838_v52 = vpop.f32.mrf.mxu0  ;;  %v879_v53 = vpop.f32.mrf.mxu1 }
 0x149   : > { %v884_v54 = vrot.slane %v883_v44, 2  ;;  %v916_v55 = vadd.f32 %v915_v45, %v911_v39  ;;  %v896_v56 = vrot.slane %v895_v46, 2  ;;  %v928_v57 = vadd.f32 %v927_v47, %v913_v41 }
 0x14a   : > { %v889_v58 = vadd.f32 %v888_v48, %v2228_v42  ;;  %v921_v59 = vrot.slane %v912_v49, 4  ;;  %v901_v60 = vadd.f32 %v900_v50, %v2230_v43  ;;  %v933_v61 = vrot.slane %v914_v51, 4  ;;  %v839_v62 = vpop.f32.mrf.mxu0  ;;  %v880_v63 = vpop.f32.mrf.mxu1 }
 0x14b   : > { %v885_v0 = vadd.f32 %v884_v54, %v883_v44  ;;  %v917_v1 = vrot.slane %v916_v55, 2  ;;  %v897_v2 = vadd.f32 %v896_v56, %v895_v46  ;;  %v929_v3 = vrot.slane %v928_v57, 2  ;;  %v963_v63 = vld [vmem:[%s2109_s15] ss:$2 sm:$0xf] }
 0x14c   : > { %v890_v4 = vrot.slane %v889_v58, 2  ;;  %v922_v5 = vadd.f32 %v921_v59, %v912_v49  ;;  %v902_v6 = vrot.slane %v901_v60, 2  ;;  %v934_v7 = vadd.f32 %v933_v61, %v914_v51 }
 0x14d   : > { %v886_v8 = vrot.slane %v885_v0, 1  ;;  %v918_v9 = vadd.f32 %v917_v1, %v916_v55  ;;  %v898_v10 = vrot.slane %v897_v2, 1  ;;  %v930_v11 = vadd.f32 %v929_v3, %v928_v57 }
 0x14e   : > { %v891_v12 = vadd.f32 %v890_v4, %v889_v58  ;;  %v923_v13 = vrot.slane %v922_v5, 2  ;;  %v903_v14 = vadd.f32 %v902_v6, %v901_v60  ;;  %v935_v15 = vrot.slane %v934_v7, 2  ;;  %v1583_v6 = vld [vmem:[%s2109_s15 + $0x1] ss:$2 sm:$0xf] }
 0x14f   : > { %v887_v16 = vadd.f32 %v886_v8, %v885_v0  ;;  %v919_v17 = vrot.slane %v918_v9, 1  ;;  %v899_v18 = vadd.f32 %v898_v10, %v897_v2  ;;  %v931_v19 = vrot.slane %v930_v11, 1 }
 0x150   : > { %v892_v20 = vrot.slane %v891_v12, 1  ;;  %v924_v21 = vadd.f32 %v923_v13, %v922_v5  ;;  %v904_v22 = vrot.slane %v903_v14, 1  ;;  %v936_v23 = vadd.f32 %v935_v15, %v934_v7 }
 0x151   : > { %v907_v24 = vmul.f32 0.125, %v887_v16  ;;  %v920_v25 = vadd.f32 %v919_v17, %v918_v9  ;;  %v909_v26 = vmul.f32 0.125, %v899_v18  ;;  %v932_v27 = vadd.f32 %v931_v19, %v930_v11 }
 0x152   : > { %v893_v28 = vadd.f32 %v892_v20, %v891_v12  ;;  %v925_v29 = vrot.slane %v924_v21, 1  ;;  %v905_v30 = vadd.f32 %v904_v22, %v903_v14  ;;  %v937_v31 = vrot.slane %v936_v23, 1 }
 0x153   : > { %v939_v32 = vmul.f32 0.125, %v920_v25  ;;  %v943_v33 = vmul.f32 %v907_v24, %v907_v24  ;;  %v941_v34 = vmul.f32 0.125, %v932_v27  ;;  %v945_v35 = vmul.f32 %v909_v26, %v909_v26 }
 0x154   : > { %v908_v38 = vmul.f32 0.125, %v893_v28  ;;  %v926_v39 = vadd.f32 %v925_v29, %v924_v21  ;;  %v910_v41 = vmul.f32 0.125, %v905_v30  ;;  %v938_v44 = vadd.f32 %v937_v31, %v936_v23 }
 0x155   : > { %v947_v40 = vsub.f32 %v939_v32, %v943_v33  ;;  %v949_v45 = vsub.f32 %v941_v34, %v945_v35  ;;  %v965_v54 = vlaneseq  ;;  %v989_v13 = vsub.f32 %v2218_v36, %v907_v24 }
 0x156   : > { %v940_v46 = vmul.f32 0.125, %v926_v39  ;;  %v944_v47 = vmul.f32 %v908_v38, %v908_v38  ;;  %v942_v49 = vmul.f32 0.125, %v938_v44  ;;  %v946_v50 = vmul.f32 %v910_v41, %v910_v41 }
 0x157   : > { %v951_v48 = vmax.f32 %v947_v40, 0.0  ;;  %v953_v51 = vmax.f32 %v949_v45, 0.0  ;;  %v966_v60 = vshrl.u32 %v965_v54, 7  ;;  %v991_v17 = vsub.f32 %v2220_v37, %v909_v26 }
 0x158   : > { %v948_v52 = vsub.f32 %v940_v46, %v944_v47  ;;  %v950_v55 = vsub.f32 %v942_v49, %v946_v50  ;;  %v990_v25 = vsub.f32 %v2228_v42, %v908_v38  ;;  %v992_v24 = vsub.f32 %v2230_v43, %v910_v41 }
 0x159   : > { %v955_v53 = vadd.f32 1e-05, %v951_v48  ;;  %v957_v56 = vadd.f32 1e-05, %v953_v51  ;;  %v2242_v62 = vsub.s32 0, %v966_v60  ;;  %v975_v0 = vsub.s32 2, %v966_v60 }
 0x15a   : > { %v952_v57 = vmax.f32 %v948_v52, 0.0  ;;  %v954_v58 = vmax.f32 %v950_v55, 0.0  ;;  %v971_v1 = vsub.s32 1, %v966_v60  ;;  %v979_v3 = vsub.s32 3, %v966_v60  ;;  %v1044_v51 = vld [vmem:[#allocation2] sm:$0xff] }
 0x15b   : > { %1829 = vrsqrt.f32 %v955_v53  ;;  %v968_v2 = vrot.slane %v963_v63, %v2242_v62  ;;  %v976_v4 = vrot.slane %v963_v63, %v975_v0  ;;  %v1019_v15 = vrot.slane %v1583_v6, %v2242_v62 }
 0x15c   : > { %1831 = vrsqrt.f32 %v957_v56  ;;  %v956_v59 = vadd.f32 1e-05, %v952_v57  ;;  %v958_v61 = vadd.f32 1e-05, %v954_v58  ;;  %v972_v7 = vrot.slane %v963_v63, %v971_v1 }
 0x15d   : > { %v980_v10 = vrot.slane %v963_v63, %v979_v3  ;;  %v1027_v19 = vrot.slane %v1583_v6, %v975_v0  ;;  %v1023_v28 = vrot.slane %v1583_v6, %v971_v1  ;;  %v1031_v30 = vrot.slane %v1583_v6, %v979_v3 }
 0x15e   : > { %1833 = vrsqrt.f32 %v956_v59 }
 0x15f   : > { %1835 = vrsqrt.f32 %v958_v61 }
 0x168   : > { %v1830_v5 = vpop.eup %1829 }
 0x169   : > { %v1832_v8 = vpop.eup %1831  ;;  %v985_v9 = vmul.f32 %v1830_v5, %v968_v2 }
 0x16a   : > { %v987_v11 = vmul.f32 %v1832_v8, %v976_v4 }
 0x16b   : > { %v1834_v12 = vpop.eup %1833  ;;  %v996_v14 = vrot.slane %v985_v9, %v2242_v62 }
 0x16c   : > { %v1836_v16 = vpop.eup %1835  ;;  %v1004_v18 = vrot.slane %v987_v11, %v2242_v62  ;;  %v986_v20 = vmul.f32 %v1834_v12, %v972_v7 }
 0x16d   : > { %v1009_v21 = vmul.f32 %v996_v14, %v989_v13  ;;  %v988_v22 = vmul.f32 %v1836_v16, %v980_v10 }
 0x16e   : > { %v1011_v23 = vmul.f32 %v1004_v18, %v991_v17  ;;  %v1000_v27 = vrot.slane %v986_v20, %v2242_v62 }
 0x16f   : > { %v1036_v36 = vadd.f32 %v1019_v15, %v1009_v21  ;;  %v1008_v29 = vrot.slane %v988_v22, %v2242_v62 }
 0x170   : > { %v1038_v31 = vadd.f32 %v1027_v19, %v1011_v23  ;;  %v1010_v37 = vmul.f32 %v1000_v27, %v990_v25 }
 0x171   : > { %v1012_v26 = vmul.f32 %v1008_v29, %v992_v24  ;;  %1837 = vtanh.f32 %v1036_v36 }
 0x172   : > { %v1037_v32 = vadd.f32 %v1023_v28, %v1010_v37  ;;  %1839 = vtanh.f32 %v1038_v31 }
 0x173   : > { %v1039_v33 = vadd.f32 %v1031_v30, %v1012_v26 }
 0x174   : > { %1841 = vtanh.f32 %v1037_v32 }
 0x175   : > { %1843 = vtanh.f32 %v1039_v33 }
 0x17e   : > { %v1838_v34 = vpop.eup %1837 }
 0x17f   : > { %v1840_v42 = vpop.eup %1839  ;;  %v1045_v44 = vpack.c.bf16 %v1838_v34, %v1838_v34 }
 0x180   : > { %v1047_v43 = vpack.c.bf16 %v1840_v42, %v1840_v42 }
 0x181   : > { %v1842_v35 = vpop.eup %1841 }
 0x182   : > { %v1844_v38 = vpop.eup %1843  ;;  %v1046_v39 = vpack.c.bf16 %v1842_v35, %v1842_v35 }
 0x183   : > { %v1048_v40 = vpack.c.bf16 %v1844_v38, %v1844_v38 }
 0x184   : > { %1337 = vmatprep.mubr.bf16.mxu0 %v1046_v39 }
 0x185   : > { %1377 = vmatprep.mubr.bf16.mxu1 %v1048_v40  ;;  %1338 = vmatmul.mubr.bf16.vlgmr.msra.gmra.mxu0 %v1045_v44 }
 0x186   : > { %1378 = vmatmul.mubr.bf16.vlgmr.msra.gmra.mxu1 %v1047_v43 }
 0x245   : > { %v1639_v41 = vpop.f32.mrf.mxu0 }
 0x246   : > { %v1661_v45 = vpop.f32.mrf.mxu1 }
 0x247   : > { %v1640_v46 = vpop.f32.mrf.mxu0 }
 0x248   : > { %v1641_v47 = vadd.f32 %v1640_v46, %v1639_v41  ;;  %v1662_v48 = vpop.f32.mrf.mxu1 }
 0x249   : > { %v1663_v49 = vadd.f32 %v1662_v48, %v1661_v45  ;;  %v1642_v50 = vpop.f32.mrf.mxu0 }
 0x24a   : > { %v1664_v52 = vpop.f32.mrf.mxu1 }
 0x24b   : > { %v1380_v53 = vadd.f32 %v1663_v49, %v1641_v47  ;;  %v1643_v54 = vpop.f32.mrf.mxu0  ;;  %1390 = sbr.rel (%p1616_p11) target bundleno = 658 (0x292), region = 71 }
 0x24c   : > { %v1665_v55 = vpop.f32.mrf.mxu1 }
 0x24d   : > { %v1385_v56 = vadd.f32 %v1380_v53, %v1044_v51 }
 0x24f   : > { %1386 = vst [vmem:[#allocation2] sm:$0xff] %v1385_v56 }
 0x250   : > { %v1412_v14 = vld [vmem:[%s2290_s4] sm:$0x1]  ;;  %v1617_v19 = vld [vmem:[%s2290_s4 + $0x1] ss:$0 sm:$0xff] }
 0x256   : > { %v1391_v57 = vld [vmem:[#allocation2] sm:$0xff] }
 0x257   : > { %v1392_v58 = vrot.slane %v1391_v57, 4  ;;  %v1399_v59 = vmul.f32 %v1391_v57, %v1391_v57 }
 0x259   : > { %v1393_v60 = vadd.f32 %v1392_v58, %v1391_v57  ;;  %v1400_v61 = vrot.slane %v1399_v59, 4 }
 0x25b   : > { %v1394_v63 = vrot.slane %v1393_v60, 2  ;;  %v1401_v0 = vadd.f32 %v1400_v61, %v1399_v59 }
 0x25d   : > { %v1395_v1 = vadd.f32 %v1394_v63, %v1393_v60  ;;  %v1402_v2 = vrot.slane %v1401_v0, 2 }
 0x25f   : > { %v1396_v3 = vrot.slane %v1395_v1, 1  ;;  %v1403_v4 = vadd.f32 %v1402_v2, %v1401_v0 }
 0x261   : > { %v1397_v5 = vadd.f32 %v1396_v3, %v1395_v1  ;;  %v1404_v6 = vrot.slane %v1403_v4, 1 }
 0x263   : > { %v1398_v7 = vmul.f32 0.125, %v1397_v5  ;;  %v1405_v8 = vadd.f32 %v1404_v6, %v1403_v4 }
 0x265   : > { %v1406_v9 = vmul.f32 0.125, %v1405_v8  ;;  %v1407_v10 = vmul.f32 %v1398_v7, %v1398_v7  ;;  %v1414_v17 = vsub.f32 %v1391_v57, %v1398_v7 }
 0x267   : > { %v1408_v11 = vsub.f32 %v1406_v9, %v1407_v10 }
 0x269   : > { %v1409_v12 = vmax.f32 %v1408_v11, 0.0 }
 0x26b   : > { %v1410_v13 = vadd.f32 1e-05, %v1409_v12 }
 0x26d   : > { %1845 = vrsqrt.f32 %v1410_v13 }
 0x27a   : > { %v1846_v15 = vpop.eup %1845 }
 0x27b   : > { %v1413_v16 = vmul.f32 %v1846_v15, %v1412_v14 }
 0x27d   : > { %v1418_v18 = vrot.slane %v1413_v16, %v2242_v62 }
 0x27f   : > { %v1419_v20 = vmul.f32 %v1418_v18, %v1414_v17 }
 0x281   : > { %v1425_v21 = vadd.f32 %v1617_v19, %v1419_v20 }
 0x283   : > { %1847 = vtanh.f32 %v1425_v21 }
 0x290   : > { %v1848_v22 = vpop.eup %1847 }
 0x291   : > { %1427 = vst [vmem:[#allocation4] sm:$0xff] %v1848_v22 }
 0x292 PF: > { %p1671_p12 = scmp.eq.s32.totalorder %s1949_s21, 3  ;;  %s1902_s6 = smov [#allocation4]  }
 0x293   : > { %s1435_s7 = sshll.u32 %s1902_s6, 4  ;;  %s1436_s7 = int_to_ptr.vmem [resolvable:$true] %s1435_s7 }
 0x294   : > { %s1849_s8 = scalar_lea.vmem %s1436_s7, 128  ;;  %p1856_p2 = scmp.lt.s32.totalorder %s1436_s7, %s1436_s7 }
 0x295   : > { %p1850_p13 = scmp.ne.s32.totalorder %s1436_s7, %s1849_s8  ;;  %p1857_p3 = scmp.lt.s32.totalorder %s1849_s8, %s1849_s8 }
 0x297   : > { %p1851_p0 = pnand %p1850_p13, %p1671_p12  ;;  %p1858_p4 = por %p1857_p3, %p1856_p2 }
 0x299   : > { %p1852_p1 = pneg %p1851_p0 }
 0x29b   : > { %p1859_p5 = pnand %p1858_p4, %p1852_p1 }
 0x29d   : > { %1862 = shalt.err (!%p1859_p5)
}
 0x29e   : > { %1668 = dma.vmem_to_hbm [thread:$0]  (%p1671_p12), %s1436_s7, 128, %s2291_s5, [#allocation5]  }
 0x29f   : > { %1886 = dma.done.wait (%p1671_p12), [#allocation5], 128  }
 0x2a0   : > { %1888 = vsyncadd (%p1671_p12), [#allocation5], 4294967168 }
 0x2a1 PF: > { %p13_p6 = scmp.ge.s32.totalorder %s1952_s22, 6   ;;  %s2292_s18 = smov %s1895_s19 }
 0x2a2   : > { %s2293_s19 = smov %s1961_s25  ;;  %s2294_s20 = smov %s1952_s22 }
 0x2a3   :  { %15 = sbr.rel (!%p13_p6) target bundleno = 2 (0x2), region = 110 }
 0x2a8   :  { %1448 = vsyncpa [#allocation5], 1 }
 0x2a9   :  { %1450 = vsyncpa [#allocation5 + $0x1], 1 }

</bundles_post_ra>
